<compile_context>
chip_gen: v7x
topology: tpu7x:2x2x1
jax: 0.10.0
libtpu: 0.0.40
codegen_flags: <defaults>
</compile_context>

<pallas_src>
import functools

import jax
import jax.numpy as jnp
from jax.experimental import pallas as pl
from jax.experimental.pallas import tpu as pltpu


def _round_up(x, m):
    return ((x + m - 1) // m) * m


def _embed_gather_kernel(idx_ref, table_ref, out_ref, *, groups):
    # idx_ref   : (TILE_P, G) int32 VMEM  -- G row-ids per packed output row
    # table_ref : (V, D)       VMEM       -- full (small) table, resident
    # out_ref   : (TILE_P, G*D)           -- lane-dense packed output slab
    table = table_ref[...]
    tile_p = idx_ref.shape[0]
    v = table.shape[0]
    idx = idx_ref[...]                                            # (TILE_P, G)
    iota_v = jax.lax.broadcasted_iota(jnp.int32, (tile_p, v), 1)  # (TILE_P, V)

    cols = []
    for g in range(groups):
        one_hot = (iota_v == idx[:, g:g + 1]).astype(table.dtype)  # (TILE_P, V)
        # One-hot selection on the MXU; HIGHEST precision keeps f32 rows exact.
        cols.append(jnp.dot(one_hot, table,
                            preferred_element_type=jnp.float32,
                            precision=jax.lax.Precision.HIGHEST))  # (TILE_P, D)
    packed = cols[0] if groups == 1 else jnp.concatenate(cols, axis=-1)
    out_ref[...] = packed.astype(out_ref.dtype)


def cf_tower_embed(items, table, *, min_pallas_rows=0, target_rows=512):
    """Embedding lookup: integer items [...] -> features [..., D]."""
    orig_shape = items.shape
    flat = items.reshape(-1).astype(jnp.int32)
    n = int(flat.shape[0])
    V, D = table.shape

    if n < min_pallas_rows:
        # Tiny lookups: XLA's native gather beats pallas_call launch cost.
        return jnp.take(table, flat, axis=0).reshape(*orig_shape, D)

    # Pack G rows of width D into one 128-lane output slab (lane-dense stores).
    G = 128 // D if (D < 128 and 128 % D == 0) else 1
    row_align = 8 * G                       # keep TILE_P a multiple of 8
    rows_per_step = _round_up(min(target_rows, _round_up(n, row_align)),
                              row_align)
    tile_p = rows_per_step // G
    n_pad = _round_up(n, rows_per_step)
    num_steps = n_pad // rows_per_step

    if n_pad != n:
        # Padded ids are 0 -> they gather row 0 and are sliced off below.
        flat = jnp.pad(flat, (0, n_pad - n))
    idx2 = flat.reshape(n_pad // G, G)      # idx2[p, g] = flat[p*G + g]

    kernel = functools.partial(_embed_gather_kernel, groups=G)
    out_packed = pl.pallas_call(
        kernel,
        out_shape=jax.ShapeDtypeStruct((n_pad // G, G * D), table.dtype),
        grid=(num_steps,),
        in_specs=[
            pl.BlockSpec((tile_p, G), lambda t: (t, 0)),   # indices, VMEM block
            pl.BlockSpec((V, D), lambda t: (0, 0)),        # resident table
        ],
        out_specs=pl.BlockSpec((tile_p, G * D), lambda t: (t, 0)),
        compiler_params=pltpu.CompilerParams(
            dimension_semantics=("parallel",)),  # independent tiles -> 2 TCs on v7x
    )(idx2, table)

    # (n_pad//G, G*D) -> (n_pad, D) is a row-major bitcast; then drop padding.
    out = out_packed.reshape(n_pad, D)[:n]
    return out.reshape(*orig_shape, D)


class CFTower:
    """JAX/Pallas analogue of the frozen-embedding CFTower module."""

    def __init__(self, embedding_weight, *, min_pallas_rows=0):
        # "load_model": the frozen table is built in-script (no torch.load).
        # For the memory-bound production path on v6e/v7x, pass a bf16 table.
        self.weight = jnp.asarray(embedding_weight)     # (V, D), frozen
        self.min_pallas_rows = min_pallas_rows
        self.is_loaded = True

    @property
    def hidden_size(self):
        return self.weight.shape[1]

    @property
    def dtype(self):
        return self.weight.dtype

    @property
    def dummy_feature(self):
        return jnp.zeros((1, self.hidden_size), dtype=self.dtype)

    def __call__(self, items):
        if isinstance(items, list):
            # Mirrors the torch branch: each item list unsqueezed to (1, L).
            # NOTE: each distinct padded length compiles one kernel variant;
            # padding to multiples of 8*G already buckets nearby lengths.
            return [cf_tower_embed(it[None, :], self.weight,
                                   min_pallas_rows=self.min_pallas_rows)
                    for it in items]
        return cf_tower_embed(items, self.weight,
                              min_pallas_rows=self.min_pallas_rows)


if __name__ == "__main__":
    key = jax.random.PRNGKey(0)
    k_w, k_i = jax.random.split(key)

    V, D = 32, 32          # vocab rows, embedding_dim (hidden_size)
    B, S = 2, 8            # batch, sequence of item ids

    # Deterministic synthetic "pretrained" embedding table.
    table = jax.random.normal(k_w, (V, D), dtype=jnp.float32)
    items = jax.random.randint(k_i, (B, S), 0, V, dtype=jnp.int32)

    # min_pallas_rows=0 forces the Pallas path even at demo sizes; production
    # would raise it (e.g. 4096) so tiny lookups use XLA's native gather.
    tower = CFTower(table, min_pallas_rows=0)

    out = jax.block_until_ready(tower(items))

    # Pure-JAX reference check.
    ref = jnp.take(table, items, axis=0)
    assert out.shape == (B, S, D), out.shape
    assert jnp.allclose(out, ref, rtol=1e-6, atol=1e-6), "mismatch vs reference gather"

    # Also exercise the list-of-items branch (variable-length item lists).
    item_list = [jnp.array([1, 5, 7], dtype=jnp.int32),
                 jnp.array([0, 31], dtype=jnp.int32)]
    feats = jax.block_until_ready(tower(item_list))
    for it, f in zip(item_list, feats):
        assert f.shape == (1, it.shape[0], D)
        assert jnp.allclose(f[0], jnp.take(table, it, axis=0), rtol=1e-6, atol=1e-6)

    print("KERNEL_OK")
</pallas_src>

<mosaic_0001>
module attributes {stable_mosaic.version = 11 : i64} {
  func.func @_embed_gather_kernel(%arg0: i32, %arg1: memref<8x4xi32, #tpu.memory_space<vmem>>, %arg2: memref<32x32xf32, #tpu.memory_space<vmem>>, %arg3: memref<8x128xf32, #tpu.memory_space<vmem>>) attributes {dimension_semantics = [#tpu.dimension_semantics<parallel>], iteration_bounds = array<i64: 1>, scalar_prefetch = 0 : i64, scratch_operands = 0 : i64, tpu.core_type = #tpu.core_type<tc>, window_params = [{transform_indices = @transform_0, window_bounds = array<i64: 8, 4>}, {pipeline_mode = #tpu.pipeline_mode<synchronous>, transform_indices = @transform_1, window_bounds = array<i64: 32, 32>}, {transform_indices = @transform_2, window_bounds = array<i64: 8, 128>}]} {
    %c0 = arith.constant 0 : index
    %c0_0 = arith.constant 0 : index
    %0 = vector.load %arg2[%c0, %c0_0] : memref<32x32xf32, #tpu.memory_space<vmem>>, vector<32x32xf32>
    %c0_1 = arith.constant 0 : index
    %c0_2 = arith.constant 0 : index
    %1 = vector.load %arg1[%c0_1, %c0_2] : memref<8x4xi32, #tpu.memory_space<vmem>>, vector<8x4xi32>
    %2 = tpu.iota {dimensions = array<i32: 1>} : vector<8x32xi32>
    %3 = vector.extract_strided_slice %1 {offsets = [0, 0], sizes = [8, 1], strides = [1, 1]} : vector<8x4xi32> to vector<8x1xi32>
    %4 = vector.broadcast %3 : vector<8x1xi32> to vector<8x32xi32>
    %5 = arith.cmpi eq, %2, %4 : vector<8x32xi32>
    %6 = arith.extui %5 : vector<8x32xi1> to vector<8x32xi32>
    %7 = arith.sitofp %6 : vector<8x32xi32> to vector<8x32xf32>
    %cst = arith.constant dense<0.000000e+00> : vector<8x32xf32>
    %8 = tpu.matmul %7, %0, %cst {dimension_numbers = #tpu.dot_dimension_numbers<[1], [0], [0], [1], [0, 0, 1, 1], [], []>, precision = #tpu.contract_precision<fp32>} : vector<8x32xf32>, vector<32x32xf32>, vector<8x32xf32> -> vector<8x32xf32>
    %9 = vector.extract_strided_slice %1 {offsets = [0, 1], sizes = [8, 1], strides = [1, 1]} : vector<8x4xi32> to vector<8x1xi32>
    %10 = vector.broadcast %9 : vector<8x1xi32> to vector<8x32xi32>
    %11 = arith.cmpi eq, %2, %10 : vector<8x32xi32>
    %12 = arith.extui %11 : vector<8x32xi1> to vector<8x32xi32>
    %13 = arith.sitofp %12 : vector<8x32xi32> to vector<8x32xf32>
    %cst_3 = arith.constant dense<0.000000e+00> : vector<8x32xf32>
    %14 = tpu.matmul %13, %0, %cst_3 {dimension_numbers = #tpu.dot_dimension_numbers<[1], [0], [0], [1], [0, 0, 1, 1], [], []>, precision = #tpu.contract_precision<fp32>} : vector<8x32xf32>, vector<32x32xf32>, vector<8x32xf32> -> vector<8x32xf32>
    %15 = vector.extract_strided_slice %1 {offsets = [0, 2], sizes = [8, 1], strides = [1, 1]} : vector<8x4xi32> to vector<8x1xi32>
    %16 = vector.broadcast %15 : vector<8x1xi32> to vector<8x32xi32>
    %17 = arith.cmpi eq, %2, %16 : vector<8x32xi32>
    %18 = arith.extui %17 : vector<8x32xi1> to vector<8x32xi32>
    %19 = arith.sitofp %18 : vector<8x32xi32> to vector<8x32xf32>
    %cst_4 = arith.constant dense<0.000000e+00> : vector<8x32xf32>
    %20 = tpu.matmul %19, %0, %cst_4 {dimension_numbers = #tpu.dot_dimension_numbers<[1], [0], [0], [1], [0, 0, 1, 1], [], []>, precision = #tpu.contract_precision<fp32>} : vector<8x32xf32>, vector<32x32xf32>, vector<8x32xf32> -> vector<8x32xf32>
    %21 = vector.extract_strided_slice %1 {offsets = [0, 3], sizes = [8, 1], strides = [1, 1]} : vector<8x4xi32> to vector<8x1xi32>
    %22 = vector.broadcast %21 : vector<8x1xi32> to vector<8x32xi32>
    %23 = arith.cmpi eq, %2, %22 : vector<8x32xi32>
    %24 = arith.extui %23 : vector<8x32xi1> to vector<8x32xi32>
    %25 = arith.sitofp %24 : vector<8x32xi32> to vector<8x32xf32>
    %cst_5 = arith.constant dense<0.000000e+00> : vector<8x32xf32>
    %26 = tpu.matmul %25, %0, %cst_5 {dimension_numbers = #tpu.dot_dimension_numbers<[1], [0], [0], [1], [0, 0, 1, 1], [], []>, precision = #tpu.contract_precision<fp32>} : vector<8x32xf32>, vector<32x32xf32>, vector<8x32xf32> -> vector<8x32xf32>
    %27 = tpu.concatenate %8, %14, %20, %26 in 1 : vector<8x32xf32>, vector<8x32xf32>, vector<8x32xf32>, vector<8x32xf32> -> vector<8x128xf32>
    %c0_6 = arith.constant 0 : index
    %c0_7 = arith.constant 0 : index
    %28 = vector.load %arg3[%c0_6, %c0_7] : memref<8x128xf32, #tpu.memory_space<vmem>>, vector<8x128xf32>
    tpu.vector_store %arg3[%c0_6, %c0_7], %27 {strides = array<i32>} : memref<8x128xf32, #tpu.memory_space<vmem>>, vector<8x128xf32>,
    return
  }
  func.func @transform_0(%arg0: i32) -> (i32, i32) {
    %c0_i32 = arith.constant 0 : i32
    %c0_i32_0 = arith.constant 0 : i32
    return %arg0, %c0_i32 : i32, i32
  }
  func.func @transform_1(%arg0: i32) -> (i32, i32) {
    %c0_i32 = arith.constant 0 : i32
    %c0_i32_0 = arith.constant 0 : i32
    %c0_i32_1 = arith.constant 0 : i32
    return %c0_i32, %c0_i32_0 : i32, i32
  }
  func.func @transform_2(%arg0: i32) -> (i32, i32) {
    %c0_i32 = arith.constant 0 : i32
    %c0_i32_0 = arith.constant 0 : i32
    return %arg0, %c0_i32 : i32, i32
  }
}

</mosaic_0001>

<bundles_post_ra>
// kernel: tpu_custom_call.1
= control target key start
LH: loop header
LB: loop body
LE: loop exit
PB: predicated region body
PF: predicated region fallthrough
CT: control target
= control target key end

     0   :  { %7 = vsyncpa [#allocation3], 0  ;;  %s2971_s0 = inlined_call_operand.vmem [shape: s32[8,4], index: 0, kind: input, shape index: {}]   ;;  %s2972_s1 = inlined_call_operand.hbm [shape: f32[32,32], index: 1, kind: input, shape index: {}]   ;;  %s2973_s2 = inlined_call_operand.hbm [shape: f32[8,128], index: 2, kind: output, shape index: {}]  }
   0x1   :  { %8 = vsyncpa [#allocation4], 0  ;;  %s2694_s9 = smov [#allocation2]   ;;  %s2646_s13 = scalar_lea.hbm %s2972_s1, 512 }
   0x2   :  { %s16_s10 = sshll.u32 %s2694_s9, 4  ;;  %p2647_p0 = scmp.ne.s32.totalorder %s2972_s1, %s2646_s13  ;;  %s17_s10 = int_to_ptr.vmem [resolvable:$true] %s16_s10 }
   0x3   :  { %p2650_p1 = scmp.lt.u32.totalorder %s2646_s13, %s2972_s1 }
   0x5   :  { %p2652_p2 = pnand %p2650_p1, %p2647_p0 }
   0x7   :  { %2655 = shalt.err (!%p2652_p2)
}
   0x8   :  { %s2656_s18 = scalar_lea.vmem %s17_s10, 512  ;;  %p2661_p4 = scmp.lt.s32.totalorder %s17_s10, %s17_s10 }
   0x9   :  { %p2657_p3 = scmp.ne.s32.totalorder %s17_s10, %s2656_s18  ;;  %p2662_p5 = scmp.lt.s32.totalorder %s2656_s18, %s2656_s18 }
   0xb   :  { %p2663_p6 = por %p2662_p5, %p2661_p4 }
   0xd   :  { %p2664_p7 = pnand %p2663_p6, %p2657_p3 }
   0xf   :  { %2667 = shalt.err (!%p2664_p7)
}
  0x10   :  { %s2695_s19 = smov 128   ;;  %s2696_s20 = smov 8  }
  0x11   :  { %22 = dma.hbm_to_vmem [thread:$0]  %s2972_s1, 512, %s17_s10, [#allocation3], %s2695_s19, %s2695_s19, %s2696_s20  }
  0x12   :  { %2690 = dma.done.wait [#allocation3], 512  }
  0x13   :  { %2691 = vsyncadd [#allocation3], 4294966784  ;;  %v2697_v0 = vmov 0   ;;  %v2698_v1 = vmov 2   ;;  %v30_v2 = vld [vmem:[%s2971_s0] sm:$0xff]  ;;  %v27_v4 = vld [vmem:[#allocation2 + $0x8] sm:$0xff]  ;;  %v31_v39 = vlaneseq }
  0x14   :  { %2641 = vset.pattern.permute.xlu0 %v2697_v0  ;;  %2643 = vset.pattern.permute.xlu1 %v2698_v1  ;;  %v26_v3 = vld [vmem:[#allocation2] sm:$0xff]  ;;  %v47_v6 = vand.u32 4294901760, %v27_v4  ;;  %v2699_v7 = vmov 0.0|0.0   ;;  %v28_v9 = vld [vmem:[#allocation2 + $0x10] sm:$0xff]  ;;  %v29_v10 = vld [vmem:[#allocation2 + $0x18] sm:$0xff]  ;;  %v2700_v15 = vmov 1  }
  0x15   :  { %34 = vperm.xlu0 %2641, %v30_v2   ;;  %1023 = vperm.xlu1 %2643, %v30_v2   ;;  %v44_v5 = vand.u32 4294901760, %v26_v3  ;;  %v50_v13 = vand.u32 4294901760, %v28_v9  ;;  %v53_v14 = vand.u32 4294901760, %v29_v10  ;;  %v2701_v16 = vmov 3   ;;  %s2704_s0 = smov 32   ;;  %s2705_s1 = smov 64  }
  0x16   :  { %2443 = vmatprep.subr.bf16.mxu0 %v2699_v7  ;;  %2479 = vmatprep.subr.bf16.mxu1 %v2699_v7  ;;  %v131_v12 = vsub.f32 %v27_v4, %v47_v6  ;;  %vm2702_vm0 = vmmov 0   ;;  %v2703_v27 = vmov 0.0   ;;  %v2768_v40 = vand.u32 127, %v31_v39  ;;  %s2706_s25 = smov 96   ;;  %s2707_s26 = smov [#allocation5]  }
  0x17   :  { %v2739_v8 = vpack.c.bf16 %v47_v6, %v44_v5  ;;  %v124_v11 = vsub.f32 %v26_v3, %v44_v5  ;;  %v2742_v19 = vpack.c.bf16 %v53_v14, %v50_v13  ;;  %v138_v22 = vsub.f32 %v28_v9, %v50_v13  ;;  %2187 = vmatprep.mubr.msk.f32.mxu0 %vm2702_vm0, %v2703_v27  ;;  %s2034_s27 = sshll.u32 %s2707_s26, 4  ;;  %s2035_s27 = int_to_ptr.vmem [resolvable:$true] %s2034_s27 }
  0x18   :  { %v132_v18 = vand.u32 4294901760, %v131_v12  ;;  %v145_v23 = vsub.f32 %v29_v10, %v53_v14  ;;  %2253 = vmatprep.mubr.msk.f32.mxu1 %vm2702_vm0, %v2703_v27  ;;  %vm39_vm1 = vcmask 261120   ;;  %vm2023_vm6 = vcmask 523264   ;;  %s2668_s28 = scalar_lea.vmem %s2035_s27, 128  ;;  %p2673_p9 = scmp.lt.s32.totalorder %s2035_s27, %s2035_s27 }
  0x19   :  { %2642 = vset.pattern.permute.xlu0 %v2700_v15  ;;  %2644 = vset.pattern.permute.xlu1 %v2701_v16  ;;  %v125_v17 = vand.u32 4294901760, %v124_v11  ;;  %v139_v26 = vand.u32 4294901760, %v138_v22  ;;  %v2760_v35 = vpack.c.bf16 %v131_v12, %v124_v11  ;;  %vm2025_vm7 = vcmask 785408   ;;  %p2669_p8 = scmp.ne.s32.totalorder %s2035_s27, %s2668_s28  ;;  %p2674_p10 = scmp.lt.s32.totalorder %s2668_s28, %s2668_s28 }
  0x1a   :  { %529 = vperm.xlu0 %2642, %v30_v2   ;;  %1517 = vperm.xlu1 %2644, %v30_v2   ;;  %v133_v21 = vsub.f32 %v131_v12, %v132_v18  ;;  %v146_v28 = vand.u32 4294901760, %v145_v23  ;;  %v2762_v36 = vpack.c.bf16 %v145_v23, %v138_v22 }
  0x1b   :  { %2445 = vmatpush3.bf16.msra.mxu0 %v2739_v8  ;;  %2481 = vmatpush3.bf16.msra.mxu1 %v2739_v8  ;;  %v126_v20 = vsub.f32 %v124_v11, %v125_v17  ;;  %v140_v30 = vsub.f32 %v138_v22, %v139_v26  ;;  %v2764_v37 = vpack.c.bf16 %v132_v18, %v125_v17  ;;  %p2675_p11 = por %p2674_p10, %p2673_p9 }
  0x1c   :  { %2446 = vmatprep.subr.bf16.mxu0 %v2699_v7  ;;  %2482 = vmatprep.subr.bf16.mxu1 %v2699_v7  ;;  %v134_v25 = vand.u32 4294901760, %v133_v21  ;;  %v147_v31 = vsub.f32 %v145_v23, %v146_v28  ;;  %v2766_v38 = vpack.c.bf16 %v146_v28, %v139_v26 }
  0x1d   :  { %v127_v24 = vand.u32 4294901760, %v126_v20  ;;  %v141_v32 = vand.u32 4294901760, %v140_v30  ;;  %p2676_p12 = pnand %p2675_p11, %p2669_p8 }
  0x1e   :  { %2645 = vset.pattern.permute.xlu0 %v2701_v16  ;;  %v148_v33 = vand.u32 4294901760, %v147_v31 }
  0x1f   :  { %2448 = vmatpush3.bf16.msra.mxu0 %v2742_v19  ;;  %v2753_v29 = vpack.c.bf16 %v134_v25, %v127_v24  ;;  %2484 = vmatpush3.bf16.msra.mxu1 %v2742_v19 }
  0x20   :  { %2449 = vmatprep.subr.bf16.mxu0 %v2699_v7  ;;  %2485 = vmatprep.subr.bf16.mxu1 %v2699_v7  ;;  %v2758_v34 = vpack.c.bf16 %v148_v33, %v141_v32 }
  0x94   :  { %v35_v41 = vpop.permute.xlu0 %34  ;;  %v1024_v55 = vpop.permute.xlu1 %1023 }
  0x95   :  { %vm36_vm2 = vcmp.eq.s32.totalorder %v2768_v40, %v35_v41  ;;  %vm1025_vm4 = vcmp.eq.s32.totalorder %v2768_v40, %v1024_v55 }
  0x96   :  { %v2772_v42 = vsel %vm36_vm2, 1.0, %v2703_v27  ;;  %v2828_v57 = vsel %vm1025_vm4, 1.0, %v2703_v27 }
  0x97   :  { %v41_v43 = vsel %vm39_vm1, %v2772_v42, 0  ;;  %v1029_v58 = vsel %vm39_vm1, %v2828_v57, 0 }
  0x98   :  { %v113_v44 = vsub.f32 %v41_v43, %v41_v43  ;;  %v2848_v60 = vsub.f32 %v1029_v58, %v1029_v58 }
  0x99   :  { %v530_v45 = vpop.permute.xlu0 %529  ;;  %v1518_v56 = vpop.permute.xlu1 %1517 }
  0x9a   :  { %vm531_vm3 = vcmp.eq.s32.totalorder %v2768_v40, %v530_v45  ;;  %v114_v46 = vand.u32 4294901760, %v113_v44  ;;  %vm1519_vm5 = vcmp.eq.s32.totalorder %v2768_v40, %v1518_v56  ;;  %v1102_v62 = vand.u32 4294901760, %v2848_v60 }
  0x9b   :  { %v2778_v47 = vsel %vm531_vm3, 1.0, %v2703_v27  ;;  %v2843_v59 = vsel %vm1519_vm5, 1.0, %v2703_v27 }
  0x9c   :  { %v535_v48 = vsel %vm39_vm1, %v2778_v47, 0  ;;  %v115_v49 = vsub.f32 %v113_v44, %v114_v46  ;;  %v1523_v61 = vsel %vm39_vm1, %v2843_v59, 0  ;;  %v1103_v0 = vsub.f32 %v2848_v60, %v1102_v62 }
  0x9d   :  { %v607_v50 = vsub.f32 %v535_v48, %v535_v48  ;;  %v2860_v63 = vsub.f32 %v1523_v61, %v1523_v61 }
  0x9e   :  { %v116_v51 = vand.u32 4294901760, %v115_v49  ;;  %v1104_v2 = vand.u32 4294901760, %v1103_v0 }
  0x9f   :  { %v608_v52 = vand.u32 4294901760, %v607_v50  ;;  %v1596_v1 = vand.u32 4294901760, %v2860_v63 }
  0xa0   :  { %2188 = vmatmul.mubr.f32.vlgmr.msra.gmra.mrb[0].mxu0 %v116_v51 }
  0xa1   :  { %2451 = vmatpush3.bf16.msra.mxu0 %v2753_v29  ;;  %v609_v53 = vsub.f32 %v607_v50, %v608_v52  ;;  %2198 = vmatprep.mubr.msk.f32.mxu0 %vm2702_vm0, %v2703_v27  ;;  %v1597_v3 = vsub.f32 %v2860_v63, %v1596_v1 }
  0xa2   :  { %2452 = vmatprep.subr.bf16.mxu0 %v2699_v7 }
  0xa3   :  { %v610_v54 = vand.u32 4294901760, %v609_v53  ;;  %v1598_v4 = vand.u32 4294901760, %v1597_v3 }
  0xa5   :  { %2454 = vmatpush3.bf16.msra.mxu0 %v2758_v34  ;;  %2254 = vmatmul.mubr.f32.vlgmr.msra.gmra.mrb[0].mxu1 %v610_v54 }
  0xa6   :  { %2487 = vmatpush3.bf16.msra.mxu1 %v2753_v29  ;;  %2455 = vmatprep.subr.bf16.mxu0 %v2699_v7 }
  0xa7   :  { %2488 = vmatprep.subr.bf16.mxu1 %v2699_v7  ;;  %2264 = vmatprep.mubr.msk.f32.mxu1 %vm2702_vm0, %v2703_v27 }
  0xa8   :  { %2199 = vmatmul.mubr.msk.f32.vlgmr.msra.gmra.mrb[0].mxu0 %vm39_vm1, %v2772_v42 }
  0xa9   :  { %2457 = vmatpush3.bf16.msra.mxu0 %v2760_v35  ;;  %2209 = vmatprep.mubr.msk.f32.mxu0 %vm2702_vm0, %v2703_v27 }
  0xaa   :  { %2490 = vmatpush3.bf16.msra.mxu1 %v2758_v34  ;;  %2458 = vmatprep.subr.bf16.mxu0 %v2699_v7 }
  0xab   :  { %2491 = vmatprep.subr.bf16.mxu1 %v2699_v7 }
  0xad   :  { %2460 = vmatpush3.bf16.msra.mxu0 %v2762_v36  ;;  %2265 = vmatmul.mubr.msk.f32.vlgmr.msra.gmra.mrb[0].mxu1 %vm39_vm1, %v2778_v47 }
  0xae   :  { %2493 = vmatpush3.bf16.msra.mxu1 %v2760_v35  ;;  %2461 = vmatprep.subr.bf16.mxu0 %v2699_v7 }
  0xaf   :  { %2494 = vmatprep.subr.bf16.mxu1 %v2699_v7  ;;  %2275 = vmatprep.mubr.msk.f32.mxu1 %vm2702_vm0, %v2703_v27 }
  0xb0   :  { %2210 = vmatmul.mubr.f32.vlgmr.msra.gmra.mrb[0].mxu0 %v113_v44 }
  0xb1   :  { %2463 = vmatpush3.bf16.msra.mxu0 %v2739_v8  ;;  %2220 = vmatprep.mubr.msk.f32.mxu0 %vm2702_vm0, %v2703_v27 }
  0xb2   :  { %2496 = vmatpush3.bf16.msra.mxu1 %v2762_v36  ;;  %2464 = vmatprep.subr.bf16.mxu0 %v2699_v7 }
  0xb3   :  { %2497 = vmatprep.subr.bf16.mxu1 %v2699_v7 }
  0xb5   :  { %2466 = vmatpush3.bf16.msra.mxu0 %v2742_v19  ;;  %2276 = vmatmul.mubr.f32.vlgmr.msra.gmra.mrb[0].mxu1 %v607_v50 }
  0xb6   :  { %2499 = vmatpush3.bf16.msra.mxu1 %v2739_v8  ;;  %2467 = vmatprep.subr.bf16.mxu0 %v2699_v7 }
  0xb7   :  { %2500 = vmatprep.subr.bf16.mxu1 %v2699_v7  ;;  %2286 = vmatprep.mubr.msk.f32.mxu1 %vm2702_vm0, %v2703_v27 }
  0xb8   :  { %2221 = vmatmul.mubr.f32.vlgmr.msra.gmra.mrb[0].mxu0 %v114_v46 }
  0xb9   :  { %2469 = vmatpush3.bf16.msra.mxu0 %v2764_v37  ;;  %2231 = vmatprep.mubr.msk.f32.mxu0 %vm2702_vm0, %v2703_v27 }
  0xba   :  { %2502 = vmatpush3.bf16.msra.mxu1 %v2742_v19  ;;  %2470 = vmatprep.subr.bf16.mxu0 %v2699_v7 }
  0xbb   :  { %2503 = vmatprep.subr.bf16.mxu1 %v2699_v7 }
  0xbd   :  { %2472 = vmatpush3.bf16.msra.mxu0 %v2766_v38  ;;  %2287 = vmatmul.mubr.f32.vlgmr.msra.gmra.mrb[0].mxu1 %v608_v52 }
  0xbe   :  { %2505 = vmatpush3.bf16.msra.mxu1 %v2764_v37  ;;  %2473 = vmatprep.subr.bf16.mxu0 %v2699_v7 }
  0xbf   :  { %2506 = vmatprep.subr.bf16.mxu1 %v2699_v7  ;;  %2297 = vmatprep.mubr.msk.f32.mxu1 %vm2702_vm0, %v2703_v27 }
  0xc0   :  { %2232 = vmatmul.mubr.msk.f32.vlgmr.msra.gmra.mrb[0].mxu0 %vm39_vm1, %v2772_v42 }
  0xc1   :  { %2475 = vmatpush3.bf16.msra.mxu0 %v2739_v8  ;;  %2242 = vmatprep.mubr.msk.f32.mxu0 %vm2702_vm0, %v2703_v27 }
  0xc2   :  { %2508 = vmatpush3.bf16.msra.mxu1 %v2766_v38  ;;  %2476 = vmatprep.subr.bf16.mxu0 %v2699_v7 }
  0xc3   :  { %2509 = vmatprep.subr.bf16.mxu1 %v2699_v7 }
  0xc5   :  { %2478 = vmatpush3.bf16.msra.mxu0 %v2742_v19  ;;  %2298 = vmatmul.mubr.msk.f32.vlgmr.msra.gmra.mrb[0].mxu1 %vm39_vm1, %v2778_v47 }
  0xc6   :  { %2511 = vmatpush3.bf16.msra.mxu1 %v2739_v8  ;;  %2515 = vmatprep.subr.bf16.mxu0 %v2699_v7 }
  0xc7   :  { %2512 = vmatprep.subr.bf16.mxu1 %v2699_v7  ;;  %2308 = vmatprep.mubr.msk.f32.mxu1 %vm2702_vm0, %v2703_v27 }
  0xc8   :  { %2243 = vmatmul.mubr.msk.f32.vlgmr.msra.gmra.mrb[0].mxu0 %vm39_vm1, %v2772_v42 }
  0xc9   :  { %2517 = vmatpush3.bf16.msra.mxu0 %v2739_v8  ;;  %2319 = vmatprep.mubr.msk.f32.mxu0 %vm2702_vm0, %v2703_v27 }
  0xca   :  { %2514 = vmatpush3.bf16.msra.mxu1 %v2742_v19  ;;  %2518 = vmatprep.subr.bf16.mxu0 %v2699_v7 }
  0xcb   :  { %2551 = vmatprep.subr.bf16.mxu1 %v2699_v7 }
  0xcd   :  { %2520 = vmatpush3.bf16.msra.mxu0 %v2742_v19  ;;  %2309 = vmatmul.mubr.msk.f32.vlgmr.msra.gmra.mrb[0].mxu1 %vm39_vm1, %v2778_v47 }
  0xce   :  { %2553 = vmatpush3.bf16.msra.mxu1 %v2739_v8  ;;  %2521 = vmatprep.subr.bf16.mxu0 %v2699_v7 }
  0xcf   :  { %2554 = vmatprep.subr.bf16.mxu1 %v2699_v7  ;;  %2385 = vmatprep.mubr.msk.f32.mxu1 %vm2702_vm0, %v2703_v27 }
  0xd0   :  { %2320 = vmatmul.mubr.f32.vlgmr.msra.gmra.mrb[2].mxu0 %v1104_v2 }
  0xd1   :  { %2523 = vmatpush3.bf16.msra.mxu0 %v2753_v29  ;;  %2330 = vmatprep.mubr.msk.f32.mxu0 %vm2702_vm0, %v2703_v27 }
  0xd2   :  { %2556 = vmatpush3.bf16.msra.mxu1 %v2742_v19  ;;  %2524 = vmatprep.subr.bf16.mxu0 %v2699_v7 }
  0xd3   :  { %2557 = vmatprep.subr.bf16.mxu1 %v2699_v7 }
  0xd5   :  { %2526 = vmatpush3.bf16.msra.mxu0 %v2758_v34  ;;  %2386 = vmatmul.mubr.f32.vlgmr.msra.gmra.mrb[2].mxu1 %v1598_v4 }
  0xd6   :  { %2559 = vmatpush3.bf16.msra.mxu1 %v2753_v29  ;;  %2527 = vmatprep.subr.bf16.mxu0 %v2699_v7 }
  0xd7   :  { %2560 = vmatprep.subr.bf16.mxu1 %v2699_v7  ;;  %2396 = vmatprep.mubr.msk.f32.mxu1 %vm2702_vm0, %v2703_v27 }
  0xd8   :  { %2331 = vmatmul.mubr.msk.f32.vlgmr.msra.gmra.mrb[2].mxu0 %vm39_vm1, %v2828_v57 }
  0xd9   :  { %2529 = vmatpush3.bf16.msra.mxu0 %v2760_v35  ;;  %2341 = vmatprep.mubr.msk.f32.mxu0 %vm2702_vm0, %v2703_v27 }
  0xda   :  { %2562 = vmatpush3.bf16.msra.mxu1 %v2758_v34  ;;  %2530 = vmatprep.subr.bf16.mxu0 %v2699_v7 }
  0xdb   :  { %2563 = vmatprep.subr.bf16.mxu1 %v2699_v7 }
  0xdd   :  { %2532 = vmatpush3.bf16.msra.mxu0 %v2762_v36  ;;  %2397 = vmatmul.mubr.msk.f32.vlgmr.msra.gmra.mrb[2].mxu1 %vm39_vm1, %v2843_v59 }
  0xde   :  { %2565 = vmatpush3.bf16.msra.mxu1 %v2760_v35  ;;  %2533 = vmatprep.subr.bf16.mxu0 %v2699_v7 }
  0xdf   :  { %2566 = vmatprep.subr.bf16.mxu1 %v2699_v7  ;;  %2407 = vmatprep.mubr.msk.f32.mxu1 %vm2702_vm0, %v2703_v27 }
  0xe0   :  { %2342 = vmatmul.mubr.f32.vlgmr.msra.gmra.mrb[2].mxu0 %v2848_v60 }
  0xe1   :  { %2535 = vmatpush3.bf16.msra.mxu0 %v2739_v8  ;;  %2352 = vmatprep.mubr.msk.f32.mxu0 %vm2702_vm0, %v2703_v27 }
  0xe2   :  { %2568 = vmatpush3.bf16.msra.mxu1 %v2762_v36  ;;  %2536 = vmatprep.subr.bf16.mxu0 %v2699_v7 }
  0xe3   :  { %2569 = vmatprep.subr.bf16.mxu1 %v2699_v7 }
  0xe5   :  { %2538 = vmatpush3.bf16.msra.mxu0 %v2742_v19  ;;  %2408 = vmatmul.mubr.f32.vlgmr.msra.gmra.mrb[2].mxu1 %v2860_v63 }
  0xe6   :  { %2571 = vmatpush3.bf16.msra.mxu1 %v2739_v8  ;;  %2539 = vmatprep.subr.bf16.mxu0 %v2699_v7 }
  0xe7   :  { %2572 = vmatprep.subr.bf16.mxu1 %v2699_v7  ;;  %2418 = vmatprep.mubr.msk.f32.mxu1 %vm2702_vm0, %v2703_v27 }
  0xe8   :  { %2353 = vmatmul.mubr.f32.vlgmr.msra.gmra.mrb[2].mxu0 %v1102_v62 }
  0xe9   :  { %2541 = vmatpush3.bf16.msra.mxu0 %v2764_v37  ;;  %2363 = vmatprep.mubr.msk.f32.mxu0 %vm2702_vm0, %v2703_v27 }
  0xea   :  { %2574 = vmatpush3.bf16.msra.mxu1 %v2742_v19  ;;  %2542 = vmatprep.subr.bf16.mxu0 %v2699_v7 }
  0xeb   :  { %2575 = vmatprep.subr.bf16.mxu1 %v2699_v7 }
  0xed   :  { %2544 = vmatpush3.bf16.msra.mxu0 %v2766_v38  ;;  %2419 = vmatmul.mubr.f32.vlgmr.msra.gmra.mrb[2].mxu1 %v1596_v1 }
  0xee   :  { %2577 = vmatpush3.bf16.msra.mxu1 %v2764_v37  ;;  %2545 = vmatprep.subr.bf16.mxu0 %v2699_v7 }
  0xef   :  { %2578 = vmatprep.subr.bf16.mxu1 %v2699_v7  ;;  %2429 = vmatprep.mubr.msk.f32.mxu1 %vm2702_vm0, %v2703_v27 }
  0xf0   :  { %2364 = vmatmul.mubr.msk.f32.vlgmr.msra.gmra.mrb[2].mxu0 %vm39_vm1, %v2828_v57 }
  0xf1   :  { %2547 = vmatpush3.bf16.msra.mxu0 %v2739_v8  ;;  %2374 = vmatprep.mubr.msk.f32.mxu0 %vm2702_vm0, %v2703_v27 }
  0xf2   :  { %2580 = vmatpush3.bf16.msra.mxu1 %v2766_v38  ;;  %2548 = vmatprep.subr.bf16.mxu0 %v2699_v7 }
  0xf3   :  { %2581 = vmatprep.subr.bf16.mxu1 %v2699_v7 }
  0xf5   :  { %2550 = vmatpush3.bf16.msra.mxu0 %v2742_v19  ;;  %2430 = vmatmul.mubr.msk.f32.vlgmr.msra.gmra.mrb[2].mxu1 %vm39_vm1, %v2843_v59 }
  0xf6   :  { %2583 = vmatpush3.bf16.msra.mxu1 %v2739_v8  ;;  %2440 = vmatprep.mubr.msk.f32.mxu1 %vm2702_vm0, %v2703_v27 }
  0xf7   :  { %2584 = vmatprep.subr.bf16.mxu1 %v2699_v7 }
  0xf8   :  { %2375 = vmatmul.mubr.msk.f32.vlgmr.msra.gmra.mrb[2].mxu0 %vm39_vm1, %v2828_v57 }
  0xfa   :  { %2586 = vmatpush3.bf16.msra.mxu1 %v2742_v19 }
  0xfd   :  { %2441 = vmatmul.mubr.msk.f32.vlgmr.msra.gmra.mrb[2].mxu1 %vm39_vm1, %v2843_v59 }
 0x19b   :  { %v524_v5 = vpop.f32.mrb[0].mxu0 }
 0x19c   :  { %v2244_v6 = vpop.f32.mrb[1].mxu0 }
 0x1a0   :  { %v1018_v9 = vpop.f32.mrb[0].mxu1 }
 0x1a1   :  { %2011 = vrot.lane.b32.xlu1 %v1018_v9, %s2704_s0  ;;  %v2310_v10 = vpop.f32.mrb[1].mxu1 }
 0x1cb   :  { %v1512_v8 = vpop.f32.mrb[2].mxu0 }
 0x1cc   :  { %2015 = vrot.lane.b32.xlu0 %v1512_v8, %s2705_s1  ;;  %v2376_v11 = vpop.f32.mrb[3].mxu0 }
 0x1d0   :  { %v2006_v12 = vpop.f32.mrb[2].mxu1 }
 0x1d1   :  { %2019 = vrot.lane.b32.xlu1 %v2006_v12, %s2706_s25  ;;  %v2442_v7 = vpop.f32.mrb[3].mxu1 }
 0x213   :  { %v2012_v13 = vpop.permute.xlu1 %2011 }
 0x214   :  { %v2022_v15 = vsel %vm39_vm1, %v524_v5, %v2012_v13 }
 0x23e   :  { %v2016_v14 = vpop.permute.xlu0 %2015 }
 0x23f   :  { %v2024_v16 = vsel %vm2023_vm6, %v2022_v15, %v2016_v14 }
 0x243   :  { %v2020_v17 = vpop.permute.xlu1 %2019 }
 0x244   :  { %v2026_v18 = vsel %vm2025_vm7, %v2024_v16, %v2020_v17 }
 0x245   :  { %2027 = vst [vmem:[#allocation5] sm:$0xff] %v2026_v18 }
 0x246   :  { %2679 = shalt.err (!%p2676_p12)
}
 0x247   :  { %s2680_s3 = scalar_lea.hbm %s2973_s2, 128 }
 0x248   :  { %p2681_p13 = scmp.ne.s32.totalorder %s2973_s2, %s2680_s3  ;;  %p2684_p0 = scmp.lt.u32.totalorder %s2680_s3, %s2973_s2 }
 0x24a   :  { %p2686_p1 = pnand %p2684_p0, %p2681_p13 }
 0x24c   :  { %2689 = shalt.err (!%p2686_p1)
}
 0x24d   :  { %2037 = dma.vmem_to_hbm [thread:$0]  %s2035_s27, 128, %s2973_s2, [#allocation4]  }
 0x24e   :  { %2692 = dma.done.wait [#allocation4], 128  }
 0x24f   :  { %2693 = vsyncadd [#allocation4], 4294967168 }
 0x250   :  { %2041 = vsyncpa [#allocation3], 1 }
 0x251   :  { %2042 = vsyncpa [#allocation4], 1 }

</bundles_post_ra>
